<compile_context>
chip_gen: v7x
topology: tpu7x:2x2x1
jax: 0.10.0
libtpu: 0.0.40
codegen_flags: <defaults>
</compile_context>

<pallas_src>
import functools

import jax
import jax.numpy as jnp
from jax import lax
from jax.experimental import pallas as pl
from jax.experimental.pallas import tpu as pltpu


def _box_loss_kernel(x_ref, t_ref, acc_ref, *, n_rows, tiles_per_core):
    # x_ref / t_ref: (D, TILE_N) lane-dense blocks (fields on sublanes).
    # acc_ref: (8, TILE_N) resident per-core partial-sum accumulator.
    c = pl.program_id(0)          # core shard (parallel)
    j = pl.program_id(1)          # tile within shard (arbitrary / reduction)

    @pl.when(j == 0)
    def _init():
        acc_ref[...] = jnp.zeros_like(acc_ref)

    tile_n = x_ref.shape[1]
    blk = c * tiles_per_core + j                       # logical block id
    col = blk * tile_n + lax.broadcasted_iota(jnp.int32, (1, tile_n), 1)
    vmask = col < n_rows                               # (1, T) bool
    valid = vmask.astype(jnp.float32)

    # Zero stale/overhang lanes before any math (prevents NaN/Inf leakage from
    # partial or clamped-duplicate blocks).
    x = jnp.where(vmask, x_ref[...].astype(jnp.float32), 0.0)   # (D, T)
    t = jnp.where(vmask, t_ref[...].astype(jnp.float32), 0.0)

    bb_x, cls_x = x[:4, :], x[4:, :]
    bb_t, cls_t = t[:4, :], t[4:, :]

    # pos = (targets[..., 4:] > 0.5).any(-1); zeroed lanes give pos == 0.
    pos = jnp.any(cls_t > 0.5, axis=0, keepdims=True).astype(jnp.float32)

    # Positive-row bbox L1 contributions, kept per-coord & per-lane.
    acc_ref[0:4, :] += jnp.abs(bb_x - bb_t) * pos
    acc_ref[4:5, :] += pos

    # BCEWithLogits, numerically stable form (matches PyTorch):
    #   max(x, 0) - x*y + log(1 + exp(-|x|))
    bce = (jnp.maximum(cls_x, 0.0) - cls_x * cls_t
           + jnp.log1p(jnp.exp(-jnp.abs(cls_x))))
    acc_ref[5:6, :] += jnp.sum(bce, axis=0, keepdims=True) * valid


@functools.partial(jax.jit, static_argnames=("weights", "tile_n", "num_cores"))
def box_loss(inputs, targets, weights=(0.8, 0.2), tile_n=None, num_cores=2):
    """inputs/targets: (..., D) with D = 4 bbox coords + C class channels."""
    D = inputs.shape[-1]
    C = D - 4
    assert C >= 1, "expected at least one class channel"

    x = inputs.reshape(-1, D)
    t = targets.reshape(-1, D)
    N = x.shape[0]

    # Lane-dense layout: rows -> lanes, fields -> sublanes.
    xt = x.T                                           # (D, N)
    tt = t.T

    if tile_n is None:
        # ~1.5 MiB per (D, tile_n) f32 input buffer, capped at 16K lanes.
        tile_n = min(16384, max(128, ((3 << 17) // D) // 128 * 128))
    tile_n = int(-(-int(tile_n) // 128) * 128)         # multiple of 128
    tile_n = max(128, min(tile_n, -(-N // 128) * 128)) # don't exceed ceil(N)

    nblk = pl.cdiv(N, tile_n)                          # real blocks along N
    tpc = pl.cdiv(nblk, num_cores)                     # tiles per core shard

    def in_map(c, j):
        # Clamp so tail iterations of the last shard never issue an OOB DMA;
        # their lanes are masked out in-kernel anyway.
        return (0, jnp.minimum(c * tpc + j, nblk - 1))

    kernel = functools.partial(_box_loss_kernel, n_rows=N, tiles_per_core=tpc)

    partials = pl.pallas_call(
        kernel,
        out_shape=jax.ShapeDtypeStruct((num_cores * 8, tile_n), jnp.float32),
        grid_spec=pltpu.PrefetchScalarGridSpec(
            num_scalar_prefetch=0,
            grid=(num_cores, tpc),
            in_specs=[
                pl.BlockSpec((D, tile_n), in_map),
                pl.BlockSpec((D, tile_n), in_map),
            ],
            out_specs=pl.BlockSpec((8, tile_n), lambda c, j: (c, 0)),
        ),
        compiler_params=pltpu.CompilerParams(
            dimension_semantics=("parallel", "arbitrary")),
    )(xt, tt)

    parts = partials.reshape(num_cores, 8, tile_n)
    bb_sum = jnp.sum(parts[:, 0:4, :])
    n_pos = jnp.sum(parts[:, 4, :])
    cls_sum = jnp.sum(parts[:, 5, :])

    # bb_loss is 0 when there are no positive rows (matches the .item() branch)
    bb_loss = jnp.where(n_pos > 0, bb_sum / jnp.maximum(4.0 * n_pos, 1.0), 0.0)
    cls_loss = cls_sum / float(N * C)
    return weights[0] * bb_loss + weights[1] * cls_loss


def _box_loss_ref(inputs, targets, weights=(0.8, 0.2)):
    # Pure-JAX reference mirroring the PyTorch semantics.
    x = inputs.astype(jnp.float32)
    t = targets.astype(jnp.float32)
    pos = jnp.any(t[..., 4:] > 0.5, axis=-1)
    n_pos = jnp.sum(pos)
    bb_abs = jnp.abs(x[..., :4] - t[..., :4])
    bb_loss = jnp.where(
        n_pos > 0,
        jnp.sum(bb_abs * pos[..., None]) / jnp.maximum(n_pos * 4.0, 1.0),
        0.0)
    cx, ct = x[..., 4:], t[..., 4:]
    bce = jnp.maximum(cx, 0.0) - cx * ct + jnp.log1p(jnp.exp(-jnp.abs(cx)))
    cls_loss = jnp.mean(bce)
    return weights[0] * bb_loss + weights[1] * cls_loss


if __name__ == "__main__":
    key = jax.random.PRNGKey(0)
    k1, k2, k3, k4, k5, k6 = jax.random.split(key, 6)

    # Small case: batch=2, anchors=16, classes=4 -> D=8, N=32 (single tile).
    B, A, C = 2, 16, 4
    D = 4 + C
    inputs = jax.random.normal(k1, (B, A, D), dtype=jnp.float32)
    bb_t = jax.random.uniform(k2, (B, A, 4), dtype=jnp.float32)
    cls_t = (jax.random.uniform(k3, (B, A, C)) < 0.3).astype(jnp.float32)
    targets = jnp.concatenate([bb_t, cls_t], axis=-1)

    loss = box_loss(inputs, targets)
    jax.block_until_ready(loss)
    ref = _box_loss_ref(inputs, targets)
    assert jnp.allclose(loss, ref, rtol=1e-5, atol=1e-5), (loss, ref)

    # Multi-tile case: exercises the overhanging last block, the in-kernel
    # validity mask and the clamped tail iterations of the core shards.
    B2, A2 = 2, 300                     # N = 600 -> 5 blocks of 128 lanes
    inputs2 = jax.random.normal(k4, (B2, A2, D), dtype=jnp.float32)
    bb_t2 = jax.random.uniform(k5, (B2, A2, 4), dtype=jnp.float32)
    cls_t2 = (jax.random.uniform(k6, (B2, A2, C)) < 0.2).astype(jnp.float32)
    targets2 = jnp.concatenate([bb_t2, cls_t2], axis=-1)

    loss2 = box_loss(inputs2, targets2, tile_n=128)
    jax.block_until_ready(loss2)
    ref2 = _box_loss_ref(inputs2, targets2)
    assert jnp.allclose(loss2, ref2, rtol=1e-5, atol=1e-5), (loss2, ref2)

    print("KERNEL_OK")
</pallas_src>

<mosaic_0001>
module attributes {stable_mosaic.version = 11 : i64} {
  func.func @_box_loss_kernel(%arg0: i32, %arg1: i32, %arg2: memref<8x128xf32, #tpu.memory_space<vmem>>, %arg3: memref<8x128xf32, #tpu.memory_space<vmem>>, %arg4: memref<8x128xf32, #tpu.memory_space<vmem>>) attributes {dimension_semantics = [#tpu.dimension_semantics<parallel>, #tpu.dimension_semantics<arbitrary>], iteration_bounds = array<i64: 2, 1>, scalar_prefetch = 0 : i64, scratch_operands = 0 : i64, tpu.core_type = #tpu.core_type<tc>, window_params = [{transform_indices = @transform_0, window_bounds = array<i64: 8, 128>}, {transform_indices = @transform_1, window_bounds = array<i64: 8, 128>}, {transform_indices = @transform_2, window_bounds = array<i64: 8, 128>}]} {
    %c0_i32 = arith.constant 0 : i32
    %0 = arith.cmpi eq, %arg1, %c0_i32 : i32
    %1 = arith.extui %0 : i1 to i32
    %c0_i32_0 = arith.constant 0 : i32
    %2 = arith.cmpi ne, %1, %c0_i32_0 : i32
    scf.if %2 {
      %cst_23 = arith.constant 0.000000e+00 : f32
      %64 = vector.broadcast %cst_23 : f32 to vector<8x128xf32>
      %c0_24 = arith.constant 0 : index
      %c0_25 = arith.constant 0 : index
      %65 = vector.load %arg4[%c0_24, %c0_25] : memref<8x128xf32, #tpu.memory_space<vmem>>, vector<8x128xf32>
      tpu.vector_store %arg4[%c0_24, %c0_25], %64 {strides = array<i32>} : memref<8x128xf32, #tpu.memory_space<vmem>>, vector<8x128xf32>,
    } else {
    }
    %c1_i32 = arith.constant 1 : i32
    %3 = arith.muli %arg0, %c1_i32 : i32
    %4 = arith.addi %3, %arg1 : i32
    %c128_i32 = arith.constant 128 : i32
    %5 = arith.muli %4, %c128_i32 : i32
    %6 = tpu.iota {dimensions = array<i32: 1>} : vector<1x128xi32>
    %7 = vector.broadcast %5 : i32 to vector<1x128xi32>
    %8 = arith.addi %7, %6 : vector<1x128xi32>
    %c32_i32 = arith.constant 32 : i32
    %9 = vector.broadcast %c32_i32 : i32 to vector<1x128xi32>
    %10 = arith.cmpi slt, %8, %9 : vector<1x128xi32>
    %11 = arith.extui %10 : vector<1x128xi1> to vector<1x128xi32>
    %12 = arith.sitofp %11 : vector<1x128xi32> to vector<1x128xf32>
    %c0 = arith.constant 0 : index
    %c0_1 = arith.constant 0 : index
    %13 = vector.load %arg2[%c0, %c0_1] : memref<8x128xf32, #tpu.memory_space<vmem>>, vector<8x128xf32>
    %cst = arith.constant 0.000000e+00 : f32
    %14 = vector.shape_cast %10 : vector<1x128xi1> to vector<1x128xi1>
    %15 = vector.broadcast %14 : vector<1x128xi1> to vector<8x128xi1>
    %16 = vector.broadcast %cst : f32 to vector<8x128xf32>
    %17 = arith.select %15, %13, %16 : vector<8x128xi1>, vector<8x128xf32>
    %c0_2 = arith.constant 0 : index
    %c0_3 = arith.constant 0 : index
    %18 = vector.load %arg3[%c0_2, %c0_3] : memref<8x128xf32, #tpu.memory_space<vmem>>, vector<8x128xf32>
    %cst_4 = arith.constant 0.000000e+00 : f32
    %19 = vector.shape_cast %10 : vector<1x128xi1> to vector<1x128xi1>
    %20 = vector.broadcast %19 : vector<1x128xi1> to vector<8x128xi1>
    %21 = vector.broadcast %cst_4 : f32 to vector<8x128xf32>
    %22 = arith.select %20, %18, %21 : vector<8x128xi1>, vector<8x128xf32>
    %23 = vector.extract_strided_slice %17 {offsets = [0, 0], sizes = [4, 128], strides = [1, 1]} : vector<8x128xf32> to vector<4x128xf32>
    %24 = vector.extract_strided_slice %17 {offsets = [4, 0], sizes = [4, 128], strides = [1, 1]} : vector<8x128xf32> to vector<4x128xf32>
    %25 = vector.extract_strided_slice %22 {offsets = [0, 0], sizes = [4, 128], strides = [1, 1]} : vector<8x128xf32> to vector<4x128xf32>
    %26 = vector.extract_strided_slice %22 {offsets = [4, 0], sizes = [4, 128], strides = [1, 1]} : vector<8x128xf32> to vector<4x128xf32>
    %cst_5 = arith.constant 5.000000e-01 : f32
    %27 = vector.broadcast %cst_5 : f32 to vector<4x128xf32>
    %28 = arith.cmpf ogt, %26, %27 : vector<4x128xf32>
    %cst_6 = arith.constant 1.000000e+00 : f32
    %cst_7 = arith.constant 0.000000e+00 : f32
    %29 = vector.broadcast %cst_6 : f32 to vector<4x128xf32>
    %30 = vector.broadcast %cst_7 : f32 to vector<4x128xf32>
    %31 = arith.select %28, %29, %30 : vector<4x128xi1>, vector<4x128xf32>
    %cst_8 = arith.constant dense<0xFF800000> : vector<128xf32>
    %32 = vector.multi_reduction <maximumf>, %31, %cst_8 [0] : vector<4x128xf32> to vector<128xf32>
    %cst_9 = arith.constant 0.000000e+00 : f32
    %33 = vector.broadcast %cst_9 : f32 to vector<128xf32>
    %34 = arith.cmpf ogt, %32, %33 : vector<128xf32>
    %35 = vector.shape_cast %34 : vector<128xi1> to vector<1x128xi1>
    %36 = arith.extui %35 : vector<1x128xi1> to vector<1x128xi32>
    %37 = arith.sitofp %36 : vector<1x128xi32> to vector<1x128xf32>
    %c0_10 = arith.constant 0 : index
    %c0_11 = arith.constant 0 : index
    %38 = vector.load %arg4[%c0_10, %c0_11] : memref<8x128xf32, #tpu.memory_space<vmem>>, vector<4x128xf32>
    %39 = arith.subf %23, %25 : vector<4x128xf32>
    %40 = math.absf %39 : vector<4x128xf32>
    %41 = vector.broadcast %37 : vector<1x128xf32> to vector<4x128xf32>
    %42 = arith.mulf %40, %41 : vector<4x128xf32>
    %43 = arith.addf %38, %42 : vector<4x128xf32>
    %c0_12 = arith.constant 0 : index
    %c0_13 = arith.constant 0 : index
    %44 = vector.load %arg4[%c0_12, %c0_13] : memref<8x128xf32, #tpu.memory_space<vmem>>, vector<4x128xf32>
    tpu.vector_store %arg4[%c0_12, %c0_13], %43 {strides = array<i32>} : memref<8x128xf32, #tpu.memory_space<vmem>>, vector<4x128xf32>,
    %c4 = arith.constant 4 : index
    %c0_14 = arith.constant 0 : index
    %45 = vector.load %arg4[%c4, %c0_14] : memref<8x128xf32, #tpu.memory_space<vmem>>, vector<1x128xf32>
    %46 = arith.addf %45, %37 : vector<1x128xf32>
    %c4_15 = arith.constant 4 : index
    %c0_16 = arith.constant 0 : index
    %47 = vector.load %arg4[%c4_15, %c0_16] : memref<8x128xf32, #tpu.memory_space<vmem>>, vector<1x128xf32>
    tpu.vector_store %arg4[%c4_15, %c0_16], %46 {strides = array<i32>} : memref<8x128xf32, #tpu.memory_space<vmem>>, vector<1x128xf32>,
    %cst_17 = arith.constant 0.000000e+00 : f32
    %48 = vector.broadcast %cst_17 : f32 to vector<4x128xf32>
    %49 = arith.maximumf %24, %48 : vector<4x128xf32>
    %50 = arith.mulf %24, %26 : vector<4x128xf32>
    %51 = arith.subf %49, %50 : vector<4x128xf32>
    %52 = math.absf %24 : vector<4x128xf32>
    %cst_18 = arith.constant 0.000000e+00 : f32
    %53 = vector.broadcast %cst_18 : f32 to vector<4x128xf32>
    %54 = arith.subf %53, %52 : vector<4x128xf32>
    %55 = math.exp %54 : vector<4x128xf32>
    %56 = math.log1p %55 : vector<4x128xf32>
    %57 = arith.addf %51, %56 : vector<4x128xf32>
    %c5 = arith.constant 5 : index
    %c0_19 = arith.constant 0 : index
    %58 = vector.load %arg4[%c5, %c0_19] : memref<8x128xf32, #tpu.memory_space<vmem>>, vector<1x128xf32>
    %cst_20 = arith.constant dense<0.000000e+00> : vector<128xf32>
    %59 = vector.multi_reduction <add>, %57, %cst_20 [0] : vector<4x128xf32> to vector<128xf32>
    %60 = vector.shape_cast %59 : vector<128xf32> to vector<1x128xf32>
    %61 = arith.mulf %60, %12 : vector<1x128xf32>
    %62 = arith.addf %58, %61 : vector<1x128xf32>
    %c5_21 = arith.constant 5 : index
    %c0_22 = arith.constant 0 : index
    %63 = vector.load %arg4[%c5_21, %c0_22] : memref<8x128xf32, #tpu.memory_space<vmem>>, vector<1x128xf32>
    tpu.vector_store %arg4[%c5_21, %c0_22], %62 {strides = array<i32>} : memref<8x128xf32, #tpu.memory_space<vmem>>, vector<1x128xf32>,
    return
  }
  func.func @transform_0(%arg0: i32, %arg1: i32) -> (i32, i32) {
    %c1_i32 = arith.constant 1 : i32
    %0 = arith.muli %arg0, %c1_i32 : i32
    %1 = arith.addi %0, %arg1 : i32
    %c0_i32 = arith.constant 0 : i32
    %2 = arith.minsi %1, %c0_i32 : i32
    %c0_i32_0 = arith.constant 0 : i32
    %c0_i32_1 = arith.constant 0 : i32
    return %c0_i32_0, %2 : i32, i32
  }
  func.func @transform_1(%arg0: i32, %arg1: i32) -> (i32, i32) {
    %c1_i32 = arith.constant 1 : i32
    %0 = arith.muli %arg0, %c1_i32 : i32
    %1 = arith.addi %0, %arg1 : i32
    %c0_i32 = arith.constant 0 : i32
    %2 = arith.minsi %1, %c0_i32 : i32
    %c0_i32_0 = arith.constant 0 : i32
    %c0_i32_1 = arith.constant 0 : i32
    return %c0_i32_0, %2 : i32, i32
  }
  func.func @transform_2(%arg0: i32, %arg1: i32) -> (i32, i32) {
    %c0_i32 = arith.constant 0 : i32
    %c0_i32_0 = arith.constant 0 : i32
    return %arg0, %c0_i32 : i32, i32
  }
}

</mosaic_0001>

<bundles_post_ra>
// kernel: box_loss.1
= control target key start
LH: loop header
LB: loop body
LE: loop exit
PB: predicated region body
PF: predicated region fallthrough
CT: control target
= control target key end

     0   :  { %s444_s9 = smov 0   ;;  %s446_s10 = smov 0   ;;  %s492_s0 = inlined_call_operand.vmem [shape: f32[8,32], index: 0, kind: input, shape index: {}]   ;;  %s493_s1 = inlined_call_operand.vmem [shape: f32[8,32], index: 1, kind: input, shape index: {}]   ;;  %s494_s2 = inlined_call_operand.vmem [shape: f32[16,128], index: 2, kind: output, shape index: {}]  }
   0x1   :  { %s448_s11 = smov 0  }
   0x2 LB: > { %s24_s12 = sadd.s32 1, %s422_s10  ;;  %p360_p0 = scmp.ge.s32.totalorder %s426_s11, 1  ;;  %s426_s11 = sphi %s448_s11, %s12_s11   ;;  %s422_s10 = sphi %s446_s10, %s496_s10   ;;  %s418_s9 = sphi %s444_s9, %s495_s9  }
   0x3   : > { %p26_p1 = scmp.ge.s32.totalorder %s24_s12, 2  ;;  %p156_p2 = scmp.lt.s32.totalorder %s426_s11, 3 }
   0x5   : > { %s498_s12 = smov (%p26_p1, %s24_s12), 0  ;;  %p157_p3 = pnand %p360_p0, %p156_p2 }
   0x6   : > { %p187_p4 = scmp.lt.s32.totalorder (!%p157_p3), %s418_s9, 0  ;;  %p206_p5 = scmp.lt.s32.totalorder (!%p157_p3), %s418_s9, 1  ;;  %v217_v0 = vlaneseq (!%p157_p3)  ;;  %v428_v4 = vmov (!%p157_p3), 0.0   ;;  %vm231_vm1 = vcmask (!%p157_p3), 1047556   ;;  %vm272_vm5 = vcmask (!%p157_p3), 1043456  }
   0x7   : > { %160 = sbr.rel (%p157_p3) target bundleno = 76 (0x4c), region = 28  ;;  %s370_s13 = sshll.u32 (!%p157_p3), %s418_s9, 7 }
   0x8   : > { %v218_v1 = vand.u32 (!%p157_p3), 127, %v217_v0  ;;  %v219_v2 = vstv (!%p157_p3), %s370_s13 }
   0xa   : > { %v220_v3 = vadd.s32 (!%p157_p3), %v219_v2, %v218_v1 }
   0xc   : > { %vm221_vm0 = vcmp.lt.s32.totalorder (!%p157_p3), %v220_v3, 32 }
   0xd   : > { %v371_v48 = vsel (!%p157_p3), %vm221_vm0, 1.0, %v428_v4 }
   0xe   : > { %s188_s14 = scalar_select %p187_p4, %s418_s9, 0 }
   0xf   : > { %s500_s9 = smov (!%p206_p5, %s418_s9), 1 }
  0x10   : > { %s502_s14 = smov (!%p187_p4, %s188_s14), 0  ;;  %s369_s15 = sshll.u32 %s500_s9, 3 }
  0x11   : > { %s364_s16 = sshll.u32 %s502_s14, 3  ;;  %s465_s19 = scalar_lea.vmem %s494_s2, %s369_s15 }
  0x12   : > { %s192_s22 = scalar_lea.vmem %s492_s0, %s364_s16  ;;  %s202_s25 = scalar_lea.vmem %s493_s1, %s364_s16  ;;  %214 = vst [vmem:[%s465_s19] sm:$0xff] %v428_v4 }
  0x13   : > { %v224_v5 = vld [vmem:[%s192_s22] sm:$0xff] }
  0x14   : > { %v227_v6 = vld [vmem:[%s202_s25] sm:$0xff]  ;;  %v226_v7 = vsel %vm221_vm0, %v224_v5, 0.0 }
  0x15   : > { %v228_v8 = vsel %vm221_vm0, %v227_v6, 0.0  ;;  %v254_v9 = vand.u32 2147483647, %v226_v7  ;;  %v251_v32 = vmax.f32 %v226_v7, 0.0 }
  0x16   : > { %vm229_vm2 = vcmp.gt.f32.partialorder %v228_v8, 0.5  ;;  %v243_v18 = vsub.f32 %v226_v7, %v228_v8  ;;  %v252_v33 = vmul.f32 %v228_v8, %v226_v7 }
  0x17   : > { %v230_v10 = vsel %vm229_vm2, 1.0, %v428_v4  ;;  %v255_v12 = vsub.f32 0.0, %v254_v9 }
  0x18   : > { %v232_v11 = vsel %vm231_vm1, %v230_v10, -inf  ;;  %v244_v21 = vand.u32 2147483647, %v243_v18  ;;  %v253_v37 = vsub.f32 %v251_v32, %v252_v33 }
  0x19   : > { %v233_v13 = vrot.slane %v232_v11, 4  ;;  %v256_v14 = vmul.f32 1.442695, %v255_v12  ;;  %v248_v22 = vld [vmem:[%s465_s19 + $0x4] sm:$0x1] }
  0x1a   : > { %v242_v25 = vld [vmem:[%s465_s19] sm:$0xf]  ;;  %v268_v50 = vld [vmem:[%s465_s19 + $0x5] sm:$0x1] }
  0x1b   : > { %v234_v15 = vmax.f32 %v232_v11, %v233_v13  ;;  %400 = vpow2.f32 %v256_v14 }
  0x1d   : > { %v235_v16 = vrot.slane %v234_v15, 2 }
  0x1f   : > { %v236_v17 = vmax.f32 %v234_v15, %v235_v16 }
  0x21   : > { %v237_v19 = vrot.slane %v236_v17, 1 }
  0x23   : > { %v238_v20 = vmax.f32 %v236_v17, %v237_v19 }
  0x25   : > { %vm239_vm3 = vcmp.gt.f32.partialorder %v238_v20, 0.0  ;;  %v401_v23 = vpop.eup %400 }
  0x26   : > { %v372_v24 = vsel %vm239_vm3, 1.0, %v428_v4  ;;  %v258_v28 = vadd.f32 1.0, %v401_v23  ;;  %v261_v30 = vmul.f32 -0.5, %v401_v23  ;;  %v264_v34 = vand.u32 2147483647, %v401_v23 }
  0x27   : > { %v245_v26 = vmul.f32 %v372_v24, %v244_v21  ;;  %v249_v27 = vadd.f32 %v372_v24, %v248_v22 }
  0x28   : > { %402 = vlog2.f32 %v258_v28  ;;  %v262_v31 = vadd.f32 1.0, %v261_v30  ;;  %vm265_vm4 = vcmp.lt.f32.partialorder %v264_v34, 0.0004427343 }
  0x29   : > { %v246_v29 = vadd.f32 %v245_v26, %v242_v25  ;;  %250 = vst [vmem:[%s465_s19 + $0x4] sm:$0x1] %v249_v27 }
  0x2a   : > { %v263_v35 = vmul.f32 %v401_v23, %v262_v31 }
  0x2b   : > { %247 = vst [vmem:[%s465_s19] sm:$0xf] %v246_v29 }
  0x32   : > { %v403_v36 = vpop.eup %402 }
  0x33   : > { %v260_v38 = vmul.f32 0.6931472, %v403_v36 }
  0x35   : > { %v266_v39 = vsel %vm265_vm4, %v263_v35, %v260_v38 }
  0x36   : > { %v267_v40 = vadd.f32 %v266_v39, %v253_v37 }
  0x38   : > { %v270_v41 = vrot.slane %v267_v40, 4 }
  0x3a   : > { %v273_v42 = vsel %vm272_vm5, %v270_v41, 0.0 }
  0x3b   : > { %v274_v43 = vrot.slane %v273_v42, 4 }
  0x3d   : > { %v275_v44 = vadd.f32 %v274_v43, %v273_v42 }
  0x3f   : > { %v276_v45 = vrot.slane %v275_v44, 2 }
  0x41   : > { %v277_v46 = vadd.f32 %v276_v45, %v275_v44 }
  0x43   : > { %v278_v47 = vrot.slane %v277_v46, 1 }
  0x45   : > { %v279_v49 = vadd.f32 %v278_v47, %v277_v46 }
  0x47   : > { %v280_v51 = vmul.f32 %v371_v48, %v279_v49 }
  0x49   : > { %v281_v52 = vadd.f32 %v280_v51, %v268_v50 }
  0x4b   : > { %282 = vst [vmem:[%s465_s19 + $0x5] sm:$0x1] %v281_v52 }
  0x4c PF: > { %s12_s11 = sadd.s32 1, %s426_s11   ;;  %s495_s9 = smov %s422_s10 }
  0x4d   : > { %p9_p6 = scmp.ge.s32.totalorder %s12_s11, 4   ;;  %s496_s10 = smov %s498_s12 }
  0x4f   :  { %11 = sbr.rel (!%p9_p6) target bundleno = 2 (0x2), region = 65 }

</bundles_post_ra>
